<compile_context>
chip_gen: v5e
topology: v5e:2x2
jax: 0.10.0
libtpu: 0.0.40
codegen_flags: <defaults>
</compile_context>

<pallas_src>
import functools

import numpy as np
import jax
import jax.numpy as jnp
from jax import lax
from jax.experimental import pallas as pl
from jax.experimental.pallas import tpu as pltpu


# ----------------------------------------------------------------------------
# Pass 1: 1x1-conv projections (channel matmuls), once per (batch, tile).
# ----------------------------------------------------------------------------
def _proj_kernel(x_ref, y_ref, wq_ref, bq_ref, wk_ref, bk_ref, wv_ref, bv_ref,
                 pq_ref, pk_ref, pv_ref, *, mm_dtype, cross_value):
    """pq = Wq x + bq ; pk = Wk y + bk ; pv = (gamma Wv) vsrc + gamma bv.

      x_ref / y_ref : (1, C, t)   channel-major tiles (spatial on lanes)
      wq/wk : (Cq, C), wv : (C, C) ;  bq/bk : (Cq, 1), bv : (C, 1)  (f32 bias)
      pq/pk : (1, Cq, t) f32 ; pv : (1, C, t) f32
    """
    x = x_ref[0].astype(mm_dtype)                                   # (C, t)
    y = y_ref[0].astype(mm_dtype)                                   # (C, t)
    pq_ref[0] = (jnp.dot(wq_ref[...], x, preferred_element_type=jnp.float32)
                 + bq_ref[...]).astype(pq_ref.dtype)
    pk_ref[0] = (jnp.dot(wk_ref[...], y, preferred_element_type=jnp.float32)
                 + bk_ref[...]).astype(pk_ref.dtype)
    vsrc = y if cross_value else x          # static flag: no duplicated input
    pv_ref[0] = (jnp.dot(wv_ref[...], vsrc, preferred_element_type=jnp.float32)
                 + bv_ref[...]).astype(pv_ref.dtype)


# ----------------------------------------------------------------------------
# Pass 2a: attention, single kv tile (no online-softmax machinery).
# ----------------------------------------------------------------------------
def _attn_single_kv_kernel(pq_ref, pk_ref, pv_ref, x_ref, out_ref, *, mm_dtype):
    """out = (gamma*pv) @ softmax_j(q_i . k_j) / l + x   for one q tile.

      pq_ref : (1, Cq, tq) ; pk_ref : (1, Cq, N) ; pv_ref : (1, C, N)
      x_ref  : (1, C, tq) residual ; out_ref : (1, C, tq)
    """
    qp = pq_ref[0]                                                  # (Cq, tq)
    kp = pk_ref[0]                                                  # (Cq, N)
    # s[j, i] = q_i . k_j  (keys on sublanes, queries on lanes).
    s = lax.dot_general(kp.astype(mm_dtype), qp.astype(mm_dtype),
                        (((0,), (0,)), ((), ())),
                        preferred_element_type=jnp.float32)         # (N, tq)
    m = jnp.max(s, axis=0, keepdims=True)                           # (1, tq)
    # TODO(synk): on v6e/v7x a bf16 exp here relieves the EUP slot; kept f32 so
    # the identical kernel is also optimal on v5e (no bf16 EUP/VPU).
    p = jnp.exp(s - m)                                              # (N, tq)
    l = jnp.sum(p, axis=0, keepdims=True)                           # (1, tq)
    o = jnp.dot(pv_ref[0].astype(mm_dtype), p.astype(mm_dtype),
                preferred_element_type=jnp.float32)                 # (C, tq)
    if mm_dtype == np.dtype(np.float32):
        inv_l = 1.0 / l                       # exact on the tight-accuracy path
    else:
        inv_l = pl.reciprocal(l, approx=True)
    out_ref[0] = (o * inv_l + x_ref[0]).astype(out_ref.dtype)


# ----------------------------------------------------------------------------
# Pass 2b: attention, flash-style online softmax over multiple kv tiles.
# ----------------------------------------------------------------------------
def _attn_flash_kernel(pq_ref, pk_ref, pv_ref, x_ref, out_ref,
                       m_sc, l_sc, acc_sc, *, mm_dtype):
    """One (batch, q-tile, kv-tile) step with f32 stats and deferred norm.

      pq_ref : (1, Cq, tq) ; pk_ref : (1, Cq, tk) ; pv_ref : (1, C, tk)
      x_ref  : (1, C, tq) residual ; out_ref : (1, C, tq)
      m_sc/l_sc : (1, tq) f32 ; acc_sc : (C, tq) f32
    """
    kv = pl.program_id(2)

    @pl.when(kv == 0)
    def _init():
        m_sc[...] = jnp.full(m_sc.shape, -jnp.inf, dtype=m_sc.dtype)
        l_sc[...] = jnp.zeros(l_sc.shape, dtype=l_sc.dtype)
        acc_sc[...] = jnp.zeros(acc_sc.shape, dtype=acc_sc.dtype)

    qp = pq_ref[0]                                                  # (Cq, tq)
    kp = pk_ref[0]                                                  # (Cq, tk)
    vp = pv_ref[0]                                                  # (C, tk)
    s = lax.dot_general(kp.astype(mm_dtype), qp.astype(mm_dtype),
                        (((0,), (0,)), ((), ())),
                        preferred_element_type=jnp.float32)         # (tk, tq)

    m_prev = m_sc[...]                                              # (1, tq)
    m_new = jnp.maximum(m_prev, jnp.max(s, axis=0, keepdims=True))  # (1, tq)
    alpha = jnp.exp(m_prev - m_new)                                 # (1, tq)
    p = jnp.exp(s - m_new)                                          # (tk, tq)
    # TODO(synk): folding this row-sum into the PV matmul (ones row on vp) would
    # move the XLU reduction onto the under-utilized MXU.
    l_sc[...] = alpha * l_sc[...] + jnp.sum(p, axis=0, keepdims=True)
    acc_sc[...] = alpha * acc_sc[...] + jnp.dot(
        vp.astype(mm_dtype), p.astype(mm_dtype),
        preferred_element_type=jnp.float32)                         # (C, tq)
    m_sc[...] = m_new

    @pl.when(kv == pl.num_programs(2) - 1)
    def _finalize():
        if mm_dtype == np.dtype(np.float32):
            inv_l = 1.0 / l_sc[...]
        else:
            inv_l = pl.reciprocal(l_sc[...], approx=True)
        out_ref[0] = (acc_sc[...] * inv_l + x_ref[0]).astype(out_ref.dtype)


# ----------------------------------------------------------------------------
# Wrapper
# ----------------------------------------------------------------------------
def _choose_tile(n, max_tile):
    """Largest lane-aligned tile <= max_tile that divides n (or full n)."""
    max_tile = max(int(max_tile), 128)
    if n <= max_tile:
        return n                    # full dim is always a legal block
    if n % 128 != 0:
        return n                    # unaligned N: only the full dim is legal
    t = (max_tile // 128) * 128
    while t > 128 and n % t != 0:
        t -= 128
    return t                        # t >= 128 and (n % 128 == 0) => t | n


def _vmem_limit_bytes(per_step_bytes):
    """2x headroom over the working-set estimate, 32 MiB floor, 48 MiB cap
    (so the same setting stays safe under v7x's 64 MiB physical VMEM)."""
    return int(min(max(2 * per_step_bytes, 32 * 1024 * 1024), 48 * 1024 * 1024))


def cross_modal_attention_pallas(x, y, params, *, cross_value=True,
                                 matmul_dtype=None,
                                 max_q_tile=512, max_kv_tile=512,
                                 max_proj_tile=512):
    """CrossModalAttention forward.  x, y: (B, C, H, W) float32."""
    B, C, H, W = x.shape
    assert y.shape == x.shape
    N = H * W

    wq = params["wq"].reshape(-1, C)                               # (Cq, C)
    wk = params["wk"].reshape(-1, C)                               # (Cq, C)
    wv = params["wv"].reshape(-1, C)                               # (C, C)
    Cq = wq.shape[0]
    assert wv.shape[0] == C, "residual add requires value out-channels == C"
    bq = params["bq"].reshape(Cq, 1).astype(jnp.float32)
    bk = params["bk"].reshape(Cq, 1).astype(jnp.float32)
    gamma = jnp.asarray(params["gamma"], jnp.float32).reshape(())
    # Fold gamma into the value projection (gamma*(Wv v + bv) == (gamma Wv) v +
    # gamma bv) -> no scalar side-band inside the kernels.
    wv = gamma * wv
    bv = (gamma * params["bv"].reshape(C, 1)).astype(jnp.float32)

    if matmul_dtype is None:
        # bf16 MXU operands only pay off when the contraction dims approach the
        # MXU tile; below that the per-step casts are pure VALU overhead.
        matmul_dtype = jnp.bfloat16 if C >= 128 else jnp.float32
    mm_dtype = np.dtype(matmul_dtype)

    # Only MXU operands are cast; biases / stats / accumulation stay f32.
    wq_c = wq.astype(mm_dtype)
    wk_c = wk.astype(mm_dtype)
    wv_c = wv.astype(mm_dtype)

    # Channel-major flattened-spatial layout: reshapes only, no transposes.
    x_flat = x.reshape(B, C, N)
    y_flat = y.reshape(B, C, N)

    # ---------------- Pass 1: projections (once per batch element) ----------
    tp = _choose_tile(N, max_proj_tile)
    npj = N // tp
    proj_kernel = functools.partial(_proj_kernel, mm_dtype=mm_dtype,
                                    cross_value=cross_value)
    w_bytes = 4 * (2 * Cq * C + 2 * Cq + C * C + C)
    proj_bytes = (2 * 4 * (2 * C * tp)            # x, y tiles (double-buffered)
                  + 2 * w_bytes                   # weights (double-buffered)
                  + 2 * 4 * ((2 * Cq + C) * tp))  # pq, pk, pv tiles

    # NOTE: the weight/bias index maps are constant, so Pallas skips re-copies
    # between steps; pipeline_mode=pl.Buffered(1) would also drop their second
    # buffer (only relevant for large C under v7x's VMEM budget).
    pq, pk, pv = pl.pallas_call(
        proj_kernel,
        grid=(B, npj),
        in_specs=[
            pl.BlockSpec((1, C, tp), lambda b, i: (b, 0, i)),      # x
            pl.BlockSpec((1, C, tp), lambda b, i: (b, 0, i)),      # y
            pl.BlockSpec((Cq, C), lambda b, i: (0, 0)),            # wq
            pl.BlockSpec((Cq, 1), lambda b, i: (0, 0)),            # bq
            pl.BlockSpec((Cq, C), lambda b, i: (0, 0)),            # wk
            pl.BlockSpec((Cq, 1), lambda b, i: (0, 0)),            # bk
            pl.BlockSpec((C, C), lambda b, i: (0, 0)),             # wv (gamma-scaled)
            pl.BlockSpec((C, 1), lambda b, i: (0, 0)),             # bv (gamma-scaled)
        ],
        out_specs=(
            pl.BlockSpec((1, Cq, tp), lambda b, i: (b, 0, i)),     # pq
            pl.BlockSpec((1, Cq, tp), lambda b, i: (b, 0, i)),     # pk
            pl.BlockSpec((1, C, tp), lambda b, i: (b, 0, i)),      # pv
        ),
        out_shape=(
            jax.ShapeDtypeStruct((B, Cq, N), jnp.float32),
            jax.ShapeDtypeStruct((B, Cq, N), jnp.float32),
            jax.ShapeDtypeStruct((B, C, N), jnp.float32),
        ),
        compiler_params=pltpu.CompilerParams(
            dimension_semantics=("parallel", "parallel"),
            vmem_limit_bytes=_vmem_limit_bytes(proj_bytes)),
    )(x_flat, y_flat, wq_c, bq, wk_c, bk, wv_c, bv)

    # ---------------- Pass 2: attention + residual ---------------------------
    tq = _choose_tile(N, max_q_tile)
    tk = _choose_tile(N, max_kv_tile)
    nq = N // tq
    nkv = N // tk

    # v7x megacore: guarantee >= 2 parallel grid steps when B == 1.
    if B * nq < 2 and N % 256 == 0:
        tq = N // 2
        nq = 2

    if nkv == 1:
        # Fast path: all keys/values in one tile -> plain softmax, no scratch.
        kernel = functools.partial(_attn_single_kv_kernel, mm_dtype=mm_dtype)
        attn_bytes = (2 * 4 * (Cq * tq + Cq * N + C * N + 2 * C * tq)
                      + 4 * N * tq)
        out_flat = pl.pallas_call(
            kernel,
            grid=(B, nq),
            in_specs=[
                pl.BlockSpec((1, Cq, tq), lambda b, qi: (b, 0, qi)),   # pq
                pl.BlockSpec((1, Cq, N), lambda b, qi: (b, 0, 0)),     # pk (all)
                pl.BlockSpec((1, C, N), lambda b, qi: (b, 0, 0)),      # pv (all)
                pl.BlockSpec((1, C, tq), lambda b, qi: (b, 0, qi)),    # x (residual)
            ],
            out_specs=pl.BlockSpec((1, C, tq), lambda b, qi: (b, 0, qi)),
            out_shape=jax.ShapeDtypeStruct((B, C, N), x.dtype),
            compiler_params=pltpu.CompilerParams(
                dimension_semantics=("parallel", "parallel"),
                vmem_limit_bytes=_vmem_limit_bytes(attn_bytes)),
        )(pq, pk, pv, x_flat)
    else:
        # Flash path: kv innermost ("arbitrary"), f32 online-softmax scratch.
        kernel = functools.partial(_attn_flash_kernel, mm_dtype=mm_dtype)
        attn_bytes = (2 * 4 * (Cq * tq + Cq * tk + C * tk + 2 * C * tq)
                      + 4 * ((C + 2) * tq + tk * tq))
        out_flat = pl.pallas_call(
            kernel,
            grid=(B, nq, nkv),
            in_specs=[
                pl.BlockSpec((1, Cq, tq), lambda b, qi, ki: (b, 0, qi)),  # pq
                pl.BlockSpec((1, Cq, tk), lambda b, qi, ki: (b, 0, ki)),  # pk
                pl.BlockSpec((1, C, tk), lambda b, qi, ki: (b, 0, ki)),   # pv
                pl.BlockSpec((1, C, tq), lambda b, qi, ki: (b, 0, qi)),   # x
            ],
            out_specs=pl.BlockSpec((1, C, tq), lambda b, qi, ki: (b, 0, qi)),
            out_shape=jax.ShapeDtypeStruct((B, C, N), x.dtype),
            scratch_shapes=[
                pltpu.VMEM((1, tq), jnp.float32),   # running max
                pltpu.VMEM((1, tq), jnp.float32),   # running denominator
                pltpu.VMEM((C, tq), jnp.float32),   # unnormalized output acc
            ],
            compiler_params=pltpu.CompilerParams(
                dimension_semantics=("parallel", "parallel", "arbitrary"),
                vmem_limit_bytes=_vmem_limit_bytes(attn_bytes)),
        )(pq, pk, pv, x_flat)

    return out_flat.reshape(B, C, H, W)


# ----------------------------------------------------------------------------
# Pure-JAX reference (mirrors the PyTorch forward exactly) and params.
# ----------------------------------------------------------------------------
def cross_modal_attention_reference(x, y, params, *, cross_value=True):
    B, C, H, W = x.shape
    N = H * W
    wq = params["wq"].reshape(-1, C)
    wk = params["wk"].reshape(-1, C)
    wv = params["wv"].reshape(-1, C)
    bq, bk, bv, gamma = params["bq"], params["bk"], params["bv"], params["gamma"]
    xf = x.reshape(B, C, N)
    yf = y.reshape(B, C, N)
    pq = jnp.einsum("oc,bcn->bon", wq, xf) + bq[None, :, None]        # (B, Cq, N)
    pk = jnp.einsum("oc,bcn->bon", wk, yf) + bk[None, :, None]        # (B, Cq, N)
    vsrc = yf if cross_value else xf
    pv = jnp.einsum("oc,bcn->bon", wv, vsrc) + bv[None, :, None]      # (B, C, N)
    energy = jnp.einsum("bci,bcj->bij", pq, pk)                       # (B, N, N)
    attn = jax.nn.softmax(energy, axis=-1)
    out = jnp.einsum("bcm,bnm->bcn", pv, attn).reshape(B, C, H, W)
    return gamma[0] * out + x                                         # activation=None


def init_params(key, in_dim, ratio=8, gamma_value=0.7):
    """Deterministic parameters matching the module's shapes.

    Note: the PyTorch module initializes gamma to 0; a nonzero value is used
    here so the attention path is actually exercised.
    """
    cq = in_dim // ratio
    ks = jax.random.split(key, 6)
    return {
        "wq": 0.1 * jax.random.normal(ks[0], (cq, in_dim, 1, 1), jnp.float32),
        "bq": 0.1 * jax.random.normal(ks[1], (cq,), jnp.float32),
        "wk": 0.1 * jax.random.normal(ks[2], (cq, in_dim, 1, 1), jnp.float32),
        "bk": 0.1 * jax.random.normal(ks[3], (cq,), jnp.float32),
        "wv": 0.1 * jax.random.normal(ks[4], (in_dim, in_dim, 1, 1), jnp.float32),
        "bv": 0.1 * jax.random.normal(ks[5], (in_dim,), jnp.float32),
        "gamma": jnp.array([gamma_value], jnp.float32),
    }


if __name__ == "__main__":
    # Shapes consistent with the module: B=2, C=16, H=W=16 (N=256), ratio=8.
    B, C, H, W = 2, 16, 16, 16
    ratio = 8

    key = jax.random.PRNGKey(0)
    kx, ky, kparam = jax.random.split(key, 3)
    x = jax.random.normal(kx, (B, C, H, W), jnp.float32)
    y = jax.random.normal(ky, (B, C, H, W), jnp.float32)
    params = init_params(kparam, C, ratio=ratio, gamma_value=0.7)

    ref = cross_modal_attention_reference(x, y, params, cross_value=True)

    # 1) Default config: f32 MXU operands (C=16 < 128), single-kv-tile fast path.
    out = jax.block_until_ready(
        cross_modal_attention_pallas(x, y, params, cross_value=True))
    assert out.shape == (B, C, H, W)
    assert jnp.allclose(out, ref, atol=5e-3, rtol=5e-3), float(
        jnp.max(jnp.abs(out - ref)))

    # 2) Small tiles -> exercises the multi-kv-tile flash (online-softmax) path.
    out_flash = jax.block_until_ready(
        cross_modal_attention_pallas(x, y, params, cross_value=True,
                                     max_q_tile=128, max_kv_tile=128,
                                     max_proj_tile=128))
    assert jnp.allclose(out_flash, ref, atol=5e-3, rtol=5e-3), float(
        jnp.max(jnp.abs(out_flash - ref)))

    # 3) cross_value=False path (values taken from x instead of y).
    ref_ncv = cross_modal_attention_reference(x, y, params, cross_value=False)
    out_ncv = jax.block_until_ready(
        cross_modal_attention_pallas(x, y, params, cross_value=False))
    assert jnp.allclose(out_ncv, ref_ncv, atol=5e-3, rtol=5e-3)

    # 4) Explicit bf16 MXU operands (f32 stats/accumulation), looser tolerance.
    out_bf16 = jax.block_until_ready(
        cross_modal_attention_pallas(x, y, params, cross_value=True,
                                     matmul_dtype=jnp.bfloat16))
    assert jnp.allclose(out_bf16, ref, atol=6e-2, rtol=6e-2)

    # TODO(synk): the module's optional `activation` callable (default None),
    # its unused Dropout2d, and the commented-out weight-decay term are not
    # translated (they do not affect the default forward pass).
    print("KERNEL_OK")
</pallas_src>

<mosaic_0001>
module attributes {stable_mosaic.version = 11 : i64} {
  func.func @_proj_kernel(%arg0: i32, %arg1: i32, %arg2: memref<1x16x256xf32, #tpu.memory_space<vmem>>, %arg3: memref<1x16x256xf32, #tpu.memory_space<vmem>>, %arg4: memref<2x16xf32, #tpu.memory_space<vmem>>, %arg5: memref<2x1xf32, #tpu.memory_space<vmem>>, %arg6: memref<2x16xf32, #tpu.memory_space<vmem>>, %arg7: memref<2x1xf32, #tpu.memory_space<vmem>>, %arg8: memref<16x16xf32, #tpu.memory_space<vmem>>, %arg9: memref<16x1xf32, #tpu.memory_space<vmem>>, %arg10: memref<1x2x256xf32, #tpu.memory_space<vmem>>, %arg11: memref<1x2x256xf32, #tpu.memory_space<vmem>>, %arg12: memref<1x16x256xf32, #tpu.memory_space<vmem>>) attributes {dimension_semantics = [#tpu.dimension_semantics<parallel>, #tpu.dimension_semantics<parallel>], iteration_bounds = array<i64: 2, 1>, scalar_prefetch = 0 : i64, scratch_operands = 0 : i64, tpu.core_type = #tpu.core_type<tc>, window_params = [{transform_indices = @transform_0, window_bounds = array<i64: 1, 16, 256>}, {transform_indices = @transform_1, window_bounds = array<i64: 1, 16, 256>}, {pipeline_mode = #tpu.pipeline_mode<synchronous>, transform_indices = @transform_2, window_bounds = array<i64: 2, 16>}, {pipeline_mode = #tpu.pipeline_mode<synchronous>, transform_indices = @transform_3, window_bounds = array<i64: 2, 1>}, {pipeline_mode = #tpu.pipeline_mode<synchronous>, transform_indices = @transform_4, window_bounds = array<i64: 2, 16>}, {pipeline_mode = #tpu.pipeline_mode<synchronous>, transform_indices = @transform_5, window_bounds = array<i64: 2, 1>}, {pipeline_mode = #tpu.pipeline_mode<synchronous>, transform_indices = @transform_6, window_bounds = array<i64: 16, 16>}, {pipeline_mode = #tpu.pipeline_mode<synchronous>, transform_indices = @transform_7, window_bounds = array<i64: 16, 1>}, {transform_indices = @transform_8, window_bounds = array<i64: 1, 2, 256>}, {transform_indices = @transform_9, window_bounds = array<i64: 1, 2, 256>}, {transform_indices = @transform_10, window_bounds = array<i64: 1, 16, 256>}]} {
    %c0 = arith.constant 0 : index
    %c0_0 = arith.constant 0 : index
    %c0_1 = arith.constant 0 : index
    %0 = vector.load %arg2[%c0, %c0_0, %c0_1] : memref<1x16x256xf32, #tpu.memory_space<vmem>>, vector<1x16x256xf32>
    %1 = vector.shape_cast %0 : vector<1x16x256xf32> to vector<16x256xf32>
    %c0_2 = arith.constant 0 : index
    %c0_3 = arith.constant 0 : index
    %c0_4 = arith.constant 0 : index
    %2 = vector.load %arg3[%c0_2, %c0_3, %c0_4] : memref<1x16x256xf32, #tpu.memory_space<vmem>>, vector<1x16x256xf32>
    %3 = vector.shape_cast %2 : vector<1x16x256xf32> to vector<16x256xf32>
    %c0_5 = arith.constant 0 : index
    %c0_6 = arith.constant 0 : index
    %4 = vector.load %arg4[%c0_5, %c0_6] : memref<2x16xf32, #tpu.memory_space<vmem>>, vector<2x16xf32>
    %cst = arith.constant dense<0.000000e+00> : vector<2x256xf32>
    %5 = tpu.matmul %4, %1, %cst {dimension_numbers = #tpu.dot_dimension_numbers<[1], [0], [0], [1], [0, 0, 1, 1], [], []>} : vector<2x16xf32>, vector<16x256xf32>, vector<2x256xf32> -> vector<2x256xf32>
    %c0_7 = arith.constant 0 : index
    %c0_8 = arith.constant 0 : index
    %6 = vector.load %arg5[%c0_7, %c0_8] : memref<2x1xf32, #tpu.memory_space<vmem>>, vector<2x1xf32>
    %7 = vector.broadcast %6 : vector<2x1xf32> to vector<2x256xf32>
    %8 = arith.addf %5, %7 : vector<2x256xf32>
    %c0_9 = arith.constant 0 : index
    %c0_10 = arith.constant 0 : index
    %c0_11 = arith.constant 0 : index
    %9 = vector.load %arg10[%c0_9, %c0_10, %c0_11] : memref<1x2x256xf32, #tpu.memory_space<vmem>>, vector<1x2x256xf32>
    %10 = vector.shape_cast %9 : vector<1x2x256xf32> to vector<2x256xf32>
    %11 = vector.shape_cast %8 : vector<2x256xf32> to vector<1x2x256xf32>
    tpu.vector_store %arg10[%c0_9, %c0_10, %c0_11], %11 {strides = array<i32>} : memref<1x2x256xf32, #tpu.memory_space<vmem>>, vector<1x2x256xf32>,
    %c0_12 = arith.constant 0 : index
    %c0_13 = arith.constant 0 : index
    %12 = vector.load %arg6[%c0_12, %c0_13] : memref<2x16xf32, #tpu.memory_space<vmem>>, vector<2x16xf32>
    %cst_14 = arith.constant dense<0.000000e+00> : vector<2x256xf32>
    %13 = tpu.matmul %12, %3, %cst_14 {dimension_numbers = #tpu.dot_dimension_numbers<[1], [0], [0], [1], [0, 0, 1, 1], [], []>} : vector<2x16xf32>, vector<16x256xf32>, vector<2x256xf32> -> vector<2x256xf32>
    %c0_15 = arith.constant 0 : index
    %c0_16 = arith.constant 0 : index
    %14 = vector.load %arg7[%c0_15, %c0_16] : memref<2x1xf32, #tpu.memory_space<vmem>>, vector<2x1xf32>
    %15 = vector.broadcast %14 : vector<2x1xf32> to vector<2x256xf32>
    %16 = arith.addf %13, %15 : vector<2x256xf32>
    %c0_17 = arith.constant 0 : index
    %c0_18 = arith.constant 0 : index
    %c0_19 = arith.constant 0 : index
    %17 = vector.load %arg11[%c0_17, %c0_18, %c0_19] : memref<1x2x256xf32, #tpu.memory_space<vmem>>, vector<1x2x256xf32>
    %18 = vector.shape_cast %17 : vector<1x2x256xf32> to vector<2x256xf32>
    %19 = vector.shape_cast %16 : vector<2x256xf32> to vector<1x2x256xf32>
    tpu.vector_store %arg11[%c0_17, %c0_18, %c0_19], %19 {strides = array<i32>} : memref<1x2x256xf32, #tpu.memory_space<vmem>>, vector<1x2x256xf32>,
    %c0_20 = arith.constant 0 : index
    %c0_21 = arith.constant 0 : index
    %20 = vector.load %arg8[%c0_20, %c0_21] : memref<16x16xf32, #tpu.memory_space<vmem>>, vector<16x16xf32>
    %cst_22 = arith.constant dense<0.000000e+00> : vector<16x256xf32>
    %21 = tpu.matmul %20, %3, %cst_22 {dimension_numbers = #tpu.dot_dimension_numbers<[1], [0], [0], [1], [0, 0, 1, 1], [], []>} : vector<16x16xf32>, vector<16x256xf32>, vector<16x256xf32> -> vector<16x256xf32>
    %c0_23 = arith.constant 0 : index
    %c0_24 = arith.constant 0 : index
    %22 = vector.load %arg9[%c0_23, %c0_24] : memref<16x1xf32, #tpu.memory_space<vmem>>, vector<16x1xf32>
    %23 = vector.broadcast %22 : vector<16x1xf32> to vector<16x256xf32>
    %24 = arith.addf %21, %23 : vector<16x256xf32>
    %c0_25 = arith.constant 0 : index
    %c0_26 = arith.constant 0 : index
    %c0_27 = arith.constant 0 : index
    %25 = vector.load %arg12[%c0_25, %c0_26, %c0_27] : memref<1x16x256xf32, #tpu.memory_space<vmem>>, vector<1x16x256xf32>
    %26 = vector.shape_cast %25 : vector<1x16x256xf32> to vector<16x256xf32>
    %27 = vector.shape_cast %24 : vector<16x256xf32> to vector<1x16x256xf32>
    tpu.vector_store %arg12[%c0_25, %c0_26, %c0_27], %27 {strides = array<i32>} : memref<1x16x256xf32, #tpu.memory_space<vmem>>, vector<1x16x256xf32>,
    return
  }
  func.func @transform_0(%arg0: i32, %arg1: i32) -> (i32, i32, i32) {
    %c0_i32 = arith.constant 0 : i32
    %c0_i32_0 = arith.constant 0 : i32
    return %arg0, %c0_i32, %arg1 : i32, i32, i32
  }
  func.func @transform_1(%arg0: i32, %arg1: i32) -> (i32, i32, i32) {
    %c0_i32 = arith.constant 0 : i32
    %c0_i32_0 = arith.constant 0 : i32
    return %arg0, %c0_i32, %arg1 : i32, i32, i32
  }
  func.func @transform_2(%arg0: i32, %arg1: i32) -> (i32, i32) {
    %c0_i32 = arith.constant 0 : i32
    %c0_i32_0 = arith.constant 0 : i32
    %c0_i32_1 = arith.constant 0 : i32
    return %c0_i32, %c0_i32_0 : i32, i32
  }
  func.func @transform_3(%arg0: i32, %arg1: i32) -> (i32, i32) {
    %c0_i32 = arith.constant 0 : i32
    %c0_i32_0 = arith.constant 0 : i32
    %c0_i32_1 = arith.constant 0 : i32
    return %c0_i32, %c0_i32_0 : i32, i32
  }
  func.func @transform_4(%arg0: i32, %arg1: i32) -> (i32, i32) {
    %c0_i32 = arith.constant 0 : i32
    %c0_i32_0 = arith.constant 0 : i32
    %c0_i32_1 = arith.constant 0 : i32
    return %c0_i32, %c0_i32_0 : i32, i32
  }
  func.func @transform_5(%arg0: i32, %arg1: i32) -> (i32, i32) {
    %c0_i32 = arith.constant 0 : i32
    %c0_i32_0 = arith.constant 0 : i32
    %c0_i32_1 = arith.constant 0 : i32
    return %c0_i32, %c0_i32_0 : i32, i32
  }
  func.func @transform_6(%arg0: i32, %arg1: i32) -> (i32, i32) {
    %c0_i32 = arith.constant 0 : i32
    %c0_i32_0 = arith.constant 0 : i32
    %c0_i32_1 = arith.constant 0 : i32
    return %c0_i32, %c0_i32_0 : i32, i32
  }
  func.func @transform_7(%arg0: i32, %arg1: i32) -> (i32, i32) {
    %c0_i32 = arith.constant 0 : i32
    %c0_i32_0 = arith.constant 0 : i32
    %c0_i32_1 = arith.constant 0 : i32
    return %c0_i32, %c0_i32_0 : i32, i32
  }
  func.func @transform_8(%arg0: i32, %arg1: i32) -> (i32, i32, i32) {
    %c0_i32 = arith.constant 0 : i32
    %c0_i32_0 = arith.constant 0 : i32
    return %arg0, %c0_i32, %arg1 : i32, i32, i32
  }
  func.func @transform_9(%arg0: i32, %arg1: i32) -> (i32, i32, i32) {
    %c0_i32 = arith.constant 0 : i32
    %c0_i32_0 = arith.constant 0 : i32
    return %arg0, %c0_i32, %arg1 : i32, i32, i32
  }
  func.func @transform_10(%arg0: i32, %arg1: i32) -> (i32, i32, i32) {
    %c0_i32 = arith.constant 0 : i32
    %c0_i32_0 = arith.constant 0 : i32
    return %arg0, %c0_i32, %arg1 : i32, i32, i32
  }
}

</mosaic_0001>

<bundles_post_ra>
// kernel: tpu_custom_call.1
= control target key start
LH: loop header
LB: loop body
LE: loop exit
PB: predicated region body
PF: predicated region fallthrough
CT: control target
= control target key end

     0   :  { %s1550_s0 = inlined_call_operand.hbm [shape: f32[2,16,256], index: 0, kind: input, shape index: {}]   ;;  %s1551_s1 = inlined_call_operand.hbm [shape: f32[2,16,256], index: 1, kind: input, shape index: {}]   ;;  %s1552_s2 = inlined_call_operand.vmem [shape: f32[2,16], index: 2, kind: input, shape index: {}]   ;;  %s1553_s3 = inlined_call_operand.vmem [shape: f32[2,1], index: 3, kind: input, shape index: {}]   ;;  %s1554_s4 = inlined_call_operand.vmem [shape: f32[2,16], index: 4, kind: input, shape index: {}]   ;;  %s1555_s5 = inlined_call_operand.vmem [shape: f32[2,1], index: 5, kind: input, shape index: {}]   ;;  %s1556_s6 = inlined_call_operand.vmem [shape: f32[16,16], index: 6, kind: input, shape index: {}]   ;;  %s1557_s7 = inlined_call_operand.vmem [shape: f32[16,1], index: 7, kind: input, shape index: {}]   ;;  %s1558_s8 = inlined_call_operand.hbm [shape: f32[2,2,256], index: 8, kind: output, shape index: {0}]   ;;  %s1559_s9 = inlined_call_operand.hbm [shape: f32[2,2,256], index: 9, kind: output, shape index: {1}]   ;;  %s1560_s10 = inlined_call_operand.hbm [shape: f32[2,16,256], index: 10, kind: output, shape index: {2}]  }
   0x1   :  { %1570 = sst [smem:[#allocation22_spill]] %s1550_s0 }
   0x2   :  { %1571 = sst [smem:[#allocation23_spill]] %s1551_s1 }
   0x3   :  { %1572 = sst [smem:[#allocation24_spill]] %s1560_s10 }
   0x4   :  { %16 = vsyncpa [#allocation3], 0 }
   0x5   :  { %18 = vsyncpa [#allocation3 + $0x1], 0 }
   0x6   :  { %19 = vsyncpa [#allocation6], 0 }
   0x7   :  { %21 = vsyncpa [#allocation6 + $0x1], 0 }
   0x8   :  { %22 = vsyncpa [#allocation4], 0 }
   0x9   :  { %24 = vsyncpa [#allocation4 + $0x1], 0 }
   0xa   :  { %25 = vsyncpa [#allocation9], 0 }
   0xb   :  { %27 = vsyncpa [#allocation9 + $0x1], 0  ;;  %s1299_s13 = smov 0   ;;  %s1301_s14 = smov 0  }
   0xc   :  { %s1303_s15 = smov 0   ;;  %s1305_s16 = smov 0  }
   0xd   :  { %s1307_s17 = smov 0   ;;  %s1309_s18 = smov 0  }
   0xe LB: > { %1573 = sst [smem:[#allocation15_spill]] %s1217_s13  ;;  %s1330_s19 = sadd.s32 4294967295, %s1237_s18   ;;  %s1237_s18 = sphi %s1309_s18, %s33_s18   ;;  %s1233_s17 = sphi %s1307_s17, %s1598_s17   ;;  %s1229_s16 = sphi %s1305_s16, %s1597_s16   ;;  %s1225_s15 = sphi %s1303_s15, %s1596_s15   ;;  %s1221_s14 = sphi %s1301_s14, %s1600_s14   ;;  %s1217_s13 = sphi %s1299_s13, %s1599_s13  }
   0xf   : > { %1574 = sst [smem:[#allocation16_spill]] %s1225_s15  ;;  %s1562_s20 = sadd.s32 4294967294, %s1237_s18  }
  0x10   : > { %1575 = sst [smem:[#allocation17_spill]] %s1233_s17  ;;  %s45_s21 = sadd.s32 1, %s1233_s17 }
  0x11   : > { %1576 = sst [smem:[#allocation18_spill]] %s1330_s19  ;;  %s54_s22 = sadd.s32 1, %s1225_s15 }
  0x12   : > { %p47_p0 = scmp.ge.s32.totalorder %s45_s21, 2  ;;  %p61_p1 = scmp.ne.s32.totalorder %s1225_s15, %s1221_s14 }
  0x13   : > { %p62_p2 = scmp.eq.s32.totalorder %s1237_s18, 0  ;;  %p67_p3 = scmp.ne.s32.totalorder %s1221_s14, %s1217_s13 }
  0x14   : > { %s1602_s21 = smov (%p47_p0, %s45_s21), 0  ;;  %p68_p5 = scmp.eq.s32.totalorder %s1330_s19, 0 }
  0x15   : > { %1577 = sst [smem:[#allocation19_spill]] %s1602_s21  ;;  %p1342_p4 = por %p62_p2, %p61_p1 }
  0x16   : > { %s49_s24 = ssub.s32 %s1233_s17, %s1602_s21  ;;  %p247_p6 = scmp.eq.s32.totalorder %s1330_s19, 1 }
  0x17   : > { %p52_p7 = scmp.eq.s32.totalorder %s49_s24, 0  ;;  %p1350_p8 = por %p68_p5, %p67_p3 }
  0x18   : > { %p1354_p9 = por %p247_p6, %p61_p1  ;;  %p253_p10 = scmp.eq.s32.totalorder %s1562_s20, 1 }
  0x19   : > { %s1361_s27 = scalar_select %p52_p7, %s1225_s15, %s54_s22  }
  0x1a   : > { %p1363_p11 = por %p253_p10, %p67_p3  ;;  %p910_p12 = scmp.ge.s32.totalorder %s1237_s18, 2 }
  0x1b   : > { %1581 = sst [smem:[#allocation20_spill]] %s1361_s27  ;;  %p974_p13 = scmp.lt.s32.totalorder %s1237_s18, 2 }
  0x1c   : > { %s1582_s28 = scalar_select %p1363_p11, 1, 0 }
  0x1d   : > { %s1370_s29 = sand.u32 1, %s1225_s15   ;;  %s942_s11 = sshll.u32 %s1233_s17, 5 }
  0x1e   : > { %1583 = sst [smem:[#allocation21_spill]] %s1582_s28  ;;  %s911_s30 = sshll.u32 %s1370_s29, 5 }
  0x1f   : > { %s1584_s0 = sld [smem:[#allocation22_spill]]  ;;  %s351_s20 = scalar_lea.vmem [#allocation2], %s911_s30 }
  0x20   : > { %s361_s22 = sshll.u32 %s351_s20, 4  ;;  %p1379_p0 = pnand %p974_p13, %p1342_p4  ;;  %s362_s22 = int_to_ptr.vmem [resolvable:$true] %s361_s22 }
  0x21   : > { %p917_p1 = scmp.ge.s32.totalorder %s1237_s18, 1  ;;  %s348_s15 = scalar_lea.sflag [#allocation3], %s1370_s29 }
  0x22   : > { %s1239_s17 = smov 256   ;;  %s1240_s13 = smov 16  }
  0x23   : > { %p393_p2 = scmp.lt.s32.totalorder %s1237_s18, 3  ;;  %s1586_s1 = sld [smem:[#allocation23_spill]] }
  0x24   : > { %s375_s23 = scalar_lea.vmem [#allocation5], %s911_s30  ;;  %s372_s19 = scalar_lea.sflag [#allocation6], %s1370_s29 }
  0x25   : > { %s358_s21 = scalar_lea.hbm %s1584_s0, %s942_s11  ;;  %p394_p3 = pnand %p917_p1, %p393_p2 }
  0x26   : > { %s359_s27 = sshll.u32 %s358_s21, 4  ;;  %s385_s0 = sshll.u32 %s375_s23, 4  ;;  %s360_s27 = int_to_ptr.hbm [resolvable:$true] %s359_s27  ;;  %s386_s0 = int_to_ptr.vmem [resolvable:$true] %s385_s0 }
  0x27   : > { %960 = dma.hbm_to_vmem [thread:$0]  (!%p1379_p0), %s360_s27, 512, %s362_s22, %s348_s15, %s1239_s17, %s1239_s17, %s1240_s13  }
  0x28   : > { %397 = sbr.rel (%p394_p3) target bundleno = 221 (0xdd), region = 52  ;;  %s1395_s10 = sand.u32 (!%p394_p3), 1, %s1221_s14  }
  0x29   : > { %s382_s21 = scalar_lea.hbm %s1586_s1, %s942_s11  ;;  %s1398_s15 = sshll.u32 (!%p394_p3), %s1395_s10, 5 }
  0x2a   : > { %s383_s24 = sshll.u32 %s382_s21, 4  ;;  %s400_s27 = scalar_lea.sflag (!%p394_p3), [#allocation3], %s1395_s10  ;;  %s384_s24 = int_to_ptr.hbm [resolvable:$true] %s383_s24 }
  0x2b   : > { %963 = dma.hbm_to_vmem [thread:$0]  (!%p1379_p0), %s384_s24, 512, %s386_s0, %s372_s19, %s1239_s17, %s1239_s17, %s1240_s13  }
  0x2c   : > { %s403_s11 = scalar_lea.vmem (!%p394_p3), [#allocation2], %s1398_s15 }
  0x2d   : > { %1200 = dma.done.wait (%p1350_p8), %s400_s27, 512  }
  0x2e   : > { %1202 = vsyncadd (%p1350_p8), %s400_s27, 4294966784  ;;  %s410_s0 = scalar_lea.sflag [#allocation6], %s1395_s10  ;;  %s413_s13 = scalar_lea.vmem [#allocation5], %s1398_s15 }
  0x2f   : > { %1204 = dma.done.wait (%p1350_p8), %s410_s0, 512  }
  0x30   : > { %1206 = vsyncadd (%p1350_p8), %s410_s0, 4294966784  ;;  %v1241_v0 = vmov 0   ;;  %v473_v1 = vld [vmem:[%s403_s11 + $0x10] sm:$0xff]  ;;  %v474_v2 = vld [vmem:[%s403_s11 + $0x18] sm:$0xff]  ;;  %vm486_vm0 = vcmask 130048   ;;  %s944_s17 = sshll.u32 %s1229_s16, 2 }
  0x31   : > { %1029 = vset.pattern.permute.xlu0 %v1241_v0  ;;  %1030 = vset.pattern.permute.xlu1 %v1241_v0  ;;  %v471_v3 = vld [vmem:[%s403_s11] sm:$0xff]  ;;  %v472_v4 = vld [vmem:[%s403_s11 + $0x8] sm:$0xff]  ;;  %v477_v5 = vld [vmem:[%s413_s13 + $0x10] sm:$0xff]  ;;  %s1569_s19 = sshll.u32 %s1395_s10, 2  ;;  %s687_s29 = scalar_lea.hbm %s1558_s8, %s944_s17  ;;  %vm533_vm1 = vcmask 1041408  }
  0x32   : > { %504 = vmatpush.msra.mxu2 %v473_v1  ;;  %524 = vmatpush.msra.mxu3 %v474_v2  ;;  %v478_v6 = vld [vmem:[%s413_s13 + $0x18] sm:$0xff]  ;;  %v479_v7 = vld [vmem:[%s1552_s2] sm:$0x3]  ;;  %v476_v9 = vld [vmem:[%s413_s13 + $0x8] sm:$0xff]  ;;  %s1452_s30 = scalar_lea.vmem [#allocation10], %s1398_s15  ;;  %s451_s22 = scalar_lea.vmem [#allocation7], %s1569_s19 }
  0x33   : > { %627 = vmatpush.msra.mxu0 %v477_v5  ;;  %650 = vmatpush.msra.mxu1 %v478_v6  ;;  %v475_v8 = vld [vmem:[%s413_s13] sm:$0xff]  ;;  %v594_v14 = vld [vmem:[%s1556_s6 + $0x8] sm:$0xff]  ;;  %s689_s12 = sshll.u32 %s451_s22, 4  ;;  %s691_s20 = sshll.u32 %s687_s29, 4  ;;  %s690_s12 = int_to_ptr.vmem [resolvable:$true] %s689_s12  ;;  %s692_s20 = int_to_ptr.hbm [resolvable:$true] %s691_s20 }
  0x34   : > { %505 = vmatpush.msra.mxu2 %v471_v3  ;;  %525 = vmatpush.msra.mxu3 %v472_v4  ;;  %v593_v10 = vld [vmem:[%s1556_s6] sm:$0xff]  ;;  %v596_v16 = vld [vmem:[%s1557_s7 + $0x8] sm:$0xff]  ;;  %s946_s15 = sshll.u32 %s1229_s16, 5  ;;  %s1466_s27 = scalar_lea.hbm %s1559_s9, %s944_s17 }
  0x35   : > { %923 = vmatmul.msk.f32.vlgmr.msra.gmra.mxu2 %vm486_vm0, %v479_v7  ;;  %924 = vmatmul.msk.f32.vlgmr.msra.gmra.mxu3 %vm486_vm0, %v479_v7  ;;  %v538_v11 = vld [vmem:[%s1555_s5] sm:$0x3]  ;;  %s1587_s13 = sld [smem:[#allocation24_spill]]  ;;  %s664_s29 = scalar_lea.sflag [#allocation4], %s1395_s10 }
  0x36   : > { %581 = vmatpush.msrb.mxu3 %v478_v6  ;;  %628 = vmatpush.msra.mxu0 %v475_v8  ;;  %v595_v12 = vld [vmem:[%s1557_s7] sm:$0xff]  ;;  %s1105_s21 = sshra.s32 %s692_s20, 4  ;;  %s1111_s24 = scalar_lea.hbm %s1558_s8, 8  ;;  %s1106_s21 = int_to_ptr.hbm [resolvable:$true] %s1105_s21 }
  0x37   : > { %651 = vmatpush.msra.mxu1 %v476_v9  ;;  %561 = vmatpush.msrb.mxu2 %v477_v5  ;;  %v537_v13 = vld [vmem:[%s1554_s4] sm:$0x3]  ;;  %s1107_s19 = scalar_lea.hbm %s1106_s21, 4  ;;  %p1112_p7 = scmp.lt.s32.totalorder %s1106_s21, %s1558_s8 }
  0x38   : > { %927 = vmatmul.msk.f32.vlgmr.msra.gmra.mxu0 %vm486_vm0, %v593_v10  ;;  %929 = vmatmul.msk.f32.vlgmr.msra.gmra.mxu1 %vm486_vm0, %v593_v10  ;;  %v480_v15 = vld [vmem:[%s1553_s3] sm:$0x3]  ;;  %p1108_p4 = scmp.ne.s32.totalorder %s1106_s21, %s1107_s19  ;;  %p1113_p8 = scmp.lt.s32.totalorder %s1111_s24, %s1107_s19 }
  0x39   : > { %582 = vmatpush.msrb.mxu3 %v476_v9  ;;  %562 = vmatpush.msrb.mxu2 %v475_v8 }
  0x3a   : > { %541 = vperm.xlu0 %1029, %v538_v11   ;;  %599 = vperm.xlu1 %1030, %v595_v12   ;;  %p1109_p5 = pnand %p1108_p4, %p1354_p9  ;;  %p1114_p10 = por %p1113_p8, %p1112_p7 }
  0x3b   : > { %s1588_s25 = smov %s1587_s13  ;;  %s1471_s28 = scalar_lea.hbm %s1587_s13, %s946_s15 }
  0x3c   : > { %p1110_p6 = pneg %p1109_p5 }
  0x3d   : > { %925 = vmatmul.msk.f32.vlgmr.msrb.gmra.mxu2 %vm486_vm0, %v537_v13  ;;  %926 = vmatmul.msk.f32.vlgmr.msrb.gmra.mxu3 %vm486_vm0, %v537_v13 }
  0x3e   : > { %p1115_p13 = pnand %p1114_p10, %p1110_p6 }
  0x40   : > { %928 = vmatmul.msk.f32.gmra.mxu0 %vm486_vm0, %v594_v14  ;;  %930 = vmatmul.msk.f32.gmra.mxu1 %vm486_vm0, %v594_v14 }
  0x42   : > { %483 = vperm.xlu0 %1029, %v480_v15   ;;  %604 = vperm.xlu1 %1030, %v596_v16  }
  0xac   : > { %v542_v17 = vpop.permute.xlu0 %541  ;;  %v600_v18 = vpop.permute.xlu1 %599 }
  0xb4   : > { %v484_v23 = vpop.permute.xlu0 %483  ;;  %v605_v29 = vpop.permute.xlu1 %604 }
  0xb5   : > { %v630_v19 = vpop.f32.mrf.mxu0  ;;  %v653_v20 = vpop.f32.mrf.mxu1 }
  0xb6   : > { %v631_v21 = vadd.f32 %v630_v19, %v600_v18  ;;  %v654_v22 = vadd.f32 %v653_v20, %v600_v18 }
  0xb8   : > { %659 = vst [vmem:[%s1452_s30] sm:$0xff] %v631_v21  ;;  %v507_v24 = vpop.f32.mrf.mxu2  ;;  %v527_v25 = vpop.f32.mrf.mxu3 }
  0xb9   : > { %660 = vst [vmem:[%s1452_s30 + $0x8] sm:$0xff] %v654_v22  ;;  %v508_v26 = vadd.f32 %v507_v24, %v484_v23  ;;  %v528_v27 = vadd.f32 %v527_v25, %v484_v23 }
  0xbb   : > { %v532_v28 = vrot.slane %v528_v27, 6 }
  0xbd   : > { %v534_v30 = vsel %vm533_vm1, %v508_v26, %v532_v28  ;;  %v633_v31 = vpop.f32.mrf.mxu0  ;;  %v656_v32 = vpop.f32.mrf.mxu1 }
  0xbe   : > { %v634_v33 = vadd.f32 %v633_v31, %v605_v29  ;;  %v657_v34 = vadd.f32 %v656_v32, %v605_v29  ;;  %536 = vst [vmem:[%s451_s22] sm:$0xf] %v534_v30 }
  0xbf   : > { %1118 = shalt.err (!%p1115_p13)
}
  0xc0   : > { %s1589_s22 = sld [smem:[#allocation18_spill]]  ;;  %661 = vst [vmem:[%s1452_s30 + $0x10] sm:$0xff] %v634_v33  ;;  %v564_v35 = vpop.f32.mrf.mxu2  ;;  %v584_v36 = vpop.f32.mrf.mxu3  ;;  %s1590_s15 = sshll.u32 %s1395_s10, 2 }
  0xc1   : > { %951 = dma.vmem_to_hbm [thread:$0]  (%p1354_p9), %s690_s12, 64, %s692_s20, %s664_s29   ;;  %662 = vst [vmem:[%s1452_s30 + $0x18] sm:$0xff] %v657_v34  ;;  %v585_v37 = vadd.f32 %v584_v36, %v542_v17  ;;  %v565_v38 = vadd.f32 %v564_v35, %v542_v17 }
  0xc2   : > { %s458_s21 = scalar_lea.vmem [#allocation8], %s1590_s15  ;;  %s708_s11 = sshll.u32 %s1466_s27, 4  ;;  %s709_s11 = int_to_ptr.hbm [resolvable:$true] %s708_s11 }
  0xc3   : > { %s706_s19 = sshll.u32 %s458_s21, 4  ;;  %s1591_s0 = sshll.u32 %s1452_s30, 4  ;;  %v589_v39 = vrot.slane %v585_v37, 6  ;;  %s1492_s0 = int_to_ptr.vmem [resolvable:$true] %s1591_s0  ;;  %s707_s19 = int_to_ptr.vmem [resolvable:$true] %s706_s19 }
  0xc4   : > { %s724_s13 = sshll.u32 %s1471_s28, 4  ;;  %s1133_s12 = sshra.s32 %s709_s11, 4  ;;  %s1496_s13 = int_to_ptr.hbm [resolvable:$true] %s724_s13  ;;  %s1134_s12 = int_to_ptr.hbm [resolvable:$true] %s1133_s12 }
  0xc5   : > { %v590_v40 = vsel %vm533_vm1, %v565_v38, %v589_v39  ;;  %s1135_s20 = scalar_lea.hbm %s1134_s12, 4  ;;  %s1139_s28 = scalar_lea.hbm %s1559_s9, 8 }
  0xc6   : > { %s668_s1 = sand.u32 1, %s1589_s22   ;;  %592 = vst [vmem:[%s458_s21] sm:$0xf] %v590_v40  ;;  %p1136_p0 = scmp.ne.s32.totalorder %s1134_s12, %s1135_s20 }
  0xc7   : > { %s1498_s10 = scalar_lea.sflag [#allocation9], %s668_s1  ;;  %p1140_p3 = scmp.lt.s32.totalorder %s1134_s12, %s1559_s9 }
  0xc8   : > { %p1137_p1 = pnand %p1136_p0, %p1354_p9  ;;  %p1141_p4 = scmp.lt.s32.totalorder %s1139_s28, %s1135_s20 }
  0xca   : > { %p1138_p2 = pneg %p1137_p1  ;;  %p1142_p5 = por %p1141_p4, %p1140_p3 }
  0xcc   : > { %p1143_p6 = pnand %p1142_p5, %p1138_p2 }
  0xce   : > { %1146 = shalt.err (!%p1143_p6)
}
  0xcf   : > { %952 = dma.vmem_to_hbm [thread:$0]  (%p1354_p9), %s707_s19, 64, %s709_s11, %s1498_s10  }
  0xd0   : > { %s1161_s24 = sshra.s32 %s1496_s13, 4  ;;  %s1167_s1 = scalar_lea.hbm %s1588_s25, 64  ;;  %s1162_s24 = int_to_ptr.hbm [resolvable:$true] %s1161_s24 }
  0xd1   : > { %s1163_s17 = scalar_lea.hbm %s1162_s24, 32  ;;  %p1168_p13 = scmp.lt.s32.totalorder %s1162_s24, %s1588_s25 }
  0xd2   : > { %p1164_p7 = scmp.ne.s32.totalorder %s1162_s24, %s1163_s17  ;;  %p1169_p0 = scmp.lt.s32.totalorder %s1167_s1, %s1163_s17 }
  0xd4   : > { %p1165_p8 = pnand %p1164_p7, %p1354_p9  ;;  %p1170_p1 = por %p1169_p0, %p1168_p13 }
  0xd6   : > { %p1166_p10 = pneg %p1165_p8 }
  0xd8   : > { %p1171_p2 = pnand %p1170_p1, %p1166_p10 }
  0xda   : > { %1174 = shalt.err (!%p1171_p2)
}
  0xdb   : > { %s1242_s19 = smov 256   ;;  %s1243_s11 = smov 16  }
  0xdc   : > { %953 = dma.vmem_to_hbm [thread:$0]  (%p1354_p9), %s1492_s0, 512, %s1496_s13, %s1498_s10, %s1242_s19, %s1242_s19, %s1243_s11  }
  0xdd PF: > { %s1592_s12 = sld [smem:[#allocation15_spill]]  ;;  %p965_p3 = pnand %p910_p12, %p1363_p11 }
  0xdf   : > { %p966_p4 = pneg %p965_p3 }
  0xe3   : > { %s739_s30 = sand.u32 1, %s1592_s12  }
  0xe4   : > { %s740_s27 = scalar_lea.sflag [#allocation4], %s739_s30 }
  0xe5   : > { %1208 = dma.done.wait (%p966_p4), %s740_s27, 64  }
  0xe6   : > { %1210 = vsyncadd (%p966_p4), %s740_s27, 4294967232  ;;  %s1594_s28 = sadd.s32 4294967294, %s1237_s18  }
  0xe7   : > { %s749_s29 = sand.u32 1, %s1594_s28  }
  0xe8   : > { %s750_s16 = scalar_lea.sflag [#allocation9], %s749_s29 }
  0xe9   : > { %1212 = dma.done.wait (%p966_p4), %s750_s16, 576  }
  0xea   : > { %1214 = vsyncadd (%p966_p4), %s750_s16, 4294966720  ;;  %s33_s18 = sadd.s32 1, %s1237_s18   ;;  %s1595_s26 = sld [smem:[#allocation16_spill]] }
  0xeb   : > { %p30_p9 = scmp.ge.s32.totalorder %s33_s18, 4   ;;  %s1596_s15 = sld [smem:[#allocation20_spill]] }
  0xec   : > { %s1597_s16 = sld [smem:[#allocation17_spill]]  ;;  %s1599_s13 = smov %s1221_s14 }
  0xed   : > { %s1598_s17 = sld [smem:[#allocation19_spill]]  ;;  %32 = sbr.rel (!%p30_p9) target bundleno = 14 (0xe), region = 142 }
  0xf0   : > { %s1600_s14 = smov %s1595_s26 }
  0xf2   :  { %766 = vsyncpa [#allocation3], 1 }
  0xf3   :  { %768 = vsyncpa [#allocation3 + $0x1], 1 }
  0xf4   :  { %769 = vsyncpa [#allocation6], 1 }
  0xf5   :  { %771 = vsyncpa [#allocation6 + $0x1], 1 }
  0xf6   :  { %772 = vsyncpa [#allocation4], 1 }
  0xf7   :  { %774 = vsyncpa [#allocation4 + $0x1], 1 }
  0xf8   :  { %775 = vsyncpa [#allocation9], 1 }
  0xf9   :  { %777 = vsyncpa [#allocation9 + $0x1], 1 }

</bundles_post_ra>
